<compile_context>
chip_gen: v7x
topology: tpu7x:2x2x1
jax: 0.10.0
libtpu: 0.0.40
codegen_flags: <defaults>
</compile_context>

<pallas_src>
import functools

import jax
import jax.numpy as jnp
from jax.experimental import pallas as pl
from jax.experimental.pallas import tpu as pltpu

_LANES = 128
_SUBLANE_BY_ITEMSIZE = {4: 8, 2: 16, 1: 32}   # f32 / bf16-f16 / int8-fp8
_MIN_SPLIT_BYTES = 2 * 1024 * 1024            # only 2-way split (multi-TC) above this


def _round_up(x, m):
    return ((x + m - 1) // m) * m


def _hardshrink_kernel(x_ref, o_ref, *, lambd):
    x = x_ref[...]
    # abs-based predicate: one fewer VALU op and NaN stays NaN (matches torch).
    o_ref[...] = jnp.where(jnp.abs(x) <= lambd, jnp.zeros_like(x), x)


def _query_tpu():
    """Returns (vmem_capacity_bytes, tensorcores_per_chip) with safe fallbacks."""
    vmem_cap = 128 * 1024 * 1024
    try:
        info = pltpu.get_tpu_info()
        vmem_cap = int(getattr(info, "vmem_capacity_bytes", vmem_cap))
    except Exception:
        pass
    # v7x exposes 64 MiB VMEM per TensorCore and has 2 TCs; v5e/v6e: 128 MiB, 1 TC.
    cores = 2 if vmem_cap <= (64 * 1024 * 1024) else 1
    return vmem_cap, cores


def hardshrink(x, lambd=0.5, target_block_bytes=None):
    """Elementwise hardshrink via Pallas. Works for any input shape/dtype."""
    orig_shape = x.shape
    dtype = x.dtype
    n = x.size
    if n == 0:
        return x

    lambd = float(lambd)  # static per-module constant (matches nn.Module ctor arg)
    itemsize = jnp.dtype(dtype).itemsize
    sublane = _SUBLANE_BY_ITEMSIZE.get(itemsize, 8)
    quantum = sublane * _LANES  # minimum lane-dense tile, in elements

    # Non-conforming flat sizes would need pad + slice (2 extra HBM passes on a
    # bandwidth-bound op); a single fused jnp.where is strictly cheaper there.
    if n % quantum != 0:
        return jnp.where(jnp.abs(x) <= lambd, jnp.zeros_like(x), x)

    vmem_cap, cores = _query_tpu()
    if target_block_bytes is None:
        # Generation-aware: ~vmem/8, clamped to [2 MiB, 8 MiB].
        target_block_bytes = max(2 << 20, min(8 << 20, vmem_cap // 8))

    rows = n // _LANES                    # multiple of `sublane` by construction
    x2d = x.reshape(rows, _LANES)         # zero-copy lane-dense slab

    # Biggest sublane-aligned tile within the byte budget (unmasked full-vreg vst).
    row_tile = max(
        sublane,
        (target_block_bytes // (_LANES * itemsize)) // sublane * sublane)
    row_tile = min(row_tile, rows)

    total_bytes = n * itemsize
    if cores >= 2 and total_bytes >= _MIN_SPLIT_BYTES and rows >= 2 * sublane:
        # Even, balanced block count so both TensorCores finish together:
        # round the per-block row count UP to the sublane pack (no straggler).
        nblk = max(2, pl.cdiv(rows, row_tile))
        if nblk % 2:
            nblk += 1
        balanced = max(sublane, _round_up(pl.cdiv(rows, nblk), sublane))
        row_tile = min(row_tile, balanced)

    grid = (pl.cdiv(rows, row_tile),)     # last block masked if not divisible

    # Explicit scoped-VMEM budget: 2 in + 2 out double buffers + headroom,
    # kept well below physical capacity on every generation.
    block_bytes = row_tile * _LANES * itemsize
    vmem_limit = min(vmem_cap * 3 // 4, 4 * block_bytes + (4 << 20))
    vmem_limit = max(vmem_limit, 16 << 20)

    out2d = pl.pallas_call(
        functools.partial(_hardshrink_kernel, lambd=lambd),
        out_shape=jax.ShapeDtypeStruct((rows, _LANES), dtype),
        grid_spec=pltpu.PrefetchScalarGridSpec(
            num_scalar_prefetch=0,
            grid=grid,
            in_specs=[pl.BlockSpec((row_tile, _LANES), lambda i: (i, 0))],
            out_specs=pl.BlockSpec((row_tile, _LANES), lambda i: (i, 0)),
        ),
        compiler_params=pltpu.CompilerParams(
            dimension_semantics=("parallel",),
            vmem_limit_bytes=int(vmem_limit)),
        cost_estimate=pl.CostEstimate(
            flops=n, transcendentals=0, bytes_accessed=2 * n * itemsize),
    )(x2d)

    return out2d.reshape(orig_shape)      # zero-copy


def hardshrink_ref(x, lambd=0.5):
    # Exact PyTorch formula (NaN propagates: the predicate is False for NaN).
    return jnp.where((x >= -lambd) & (x <= lambd), jnp.zeros_like(x), x)


if __name__ == "__main__":
    key = jax.random.PRNGKey(0)
    lambd = 0.5

    # NCHW input consistent with a typical activation-module test (Pallas path:
    # 2*4*16*16 = 2048 elements, divisible by the f32 quantum).
    x = jax.random.normal(key, (2, 4, 16, 16), dtype=jnp.float32)
    # Exercise NaN propagation and exact-boundary values.
    x = x.at[0, 0, 0, 0].set(jnp.nan)
    x = x.at[0, 1, 2, 3].set(lambd)
    x = x.at[1, 2, 3, 4].set(-lambd)
    x = x.at[1, 3, 5, 6].set(0.0)

    out = jax.block_until_ready(hardshrink(x, lambd=lambd))
    ref = hardshrink_ref(x, lambd=lambd)
    assert out.shape == x.shape and out.dtype == x.dtype
    assert jnp.array_equal(out, ref, equal_nan=True), "mismatch vs reference (f32)"

    # Ragged size (not a multiple of the tile quantum): fused jnp.where fallback.
    x2 = jax.random.normal(jax.random.PRNGKey(1), (3, 5, 7, 11), dtype=jnp.float32)
    out2 = jax.block_until_ready(hardshrink(x2, lambd=lambd))
    assert jnp.array_equal(out2, hardshrink_ref(x2, lambd=lambd)), "mismatch (ragged)"

    # bf16 sanity (sublane pack = 16), Pallas path.
    x3 = jax.random.normal(jax.random.PRNGKey(2), (4, 8, 16, 16), dtype=jnp.bfloat16)
    out3 = jax.block_until_ready(hardshrink(x3, lambd=lambd))
    assert jnp.array_equal(out3, hardshrink_ref(x3, lambd=lambd)), "mismatch (bf16)"

    # Larger tensor to exercise the multi-block / balanced-split path.
    x4 = jax.random.normal(jax.random.PRNGKey(3), (8, 64, 64, 64), dtype=jnp.float32)
    out4 = jax.block_until_ready(hardshrink(x4, lambd=lambd))
    assert jnp.array_equal(out4, hardshrink_ref(x4, lambd=lambd)), "mismatch (large)"

    print("KERNEL_OK")
</pallas_src>

<mosaic_0001>
module attributes {stable_mosaic.version = 11 : i64} {
  func.func @_hardshrink_kernel(%arg0: i32, %arg1: memref<16x128xf32, #tpu.memory_space<vmem>>, %arg2: memref<16x128xf32, #tpu.memory_space<vmem>>) attributes {dimension_semantics = [#tpu.dimension_semantics<parallel>], iteration_bounds = array<i64: 1>, scalar_prefetch = 0 : i64, scratch_operands = 0 : i64, tpu.core_type = #tpu.core_type<tc>, window_params = [{transform_indices = @transform_0, window_bounds = array<i64: 16, 128>}, {transform_indices = @transform_1, window_bounds = array<i64: 16, 128>}]} {
    %c0 = arith.constant 0 : index
    %c0_0 = arith.constant 0 : index
    %0 = vector.load %arg1[%c0, %c0_0] : memref<16x128xf32, #tpu.memory_space<vmem>>, vector<16x128xf32>
    %1 = math.absf %0 : vector<16x128xf32>
    %cst = arith.constant 5.000000e-01 : f32
    %2 = vector.broadcast %cst : f32 to vector<16x128xf32>
    %3 = arith.cmpf ole, %1, %2 : vector<16x128xf32>
    %cst_1 = arith.constant 0.000000e+00 : f32
    %4 = vector.broadcast %cst_1 : f32 to vector<16x128xf32>
    %5 = arith.select %3, %4, %0 : vector<16x128xi1>, vector<16x128xf32>
    %c0_2 = arith.constant 0 : index
    %c0_3 = arith.constant 0 : index
    %6 = vector.load %arg2[%c0_2, %c0_3] : memref<16x128xf32, #tpu.memory_space<vmem>>, vector<16x128xf32>
    tpu.vector_store %arg2[%c0_2, %c0_3], %5 {strides = array<i32>} : memref<16x128xf32, #tpu.memory_space<vmem>>, vector<16x128xf32>,
    return
  }
  func.func @transform_0(%arg0: i32) -> (i32, i32) {
    %c0_i32 = arith.constant 0 : i32
    %c0_i32_0 = arith.constant 0 : i32
    return %arg0, %c0_i32 : i32, i32
  }
  func.func @transform_1(%arg0: i32) -> (i32, i32) {
    %c0_i32 = arith.constant 0 : i32
    %c0_i32_0 = arith.constant 0 : i32
    return %arg0, %c0_i32 : i32, i32
  }
}

</mosaic_0001>

<bundles_post_ra>
// kernel: tpu_custom_call.1
= control target key start
LH: loop header
LB: loop body
LE: loop exit
PB: predicated region body
PF: predicated region fallthrough
CT: control target
= control target key end

     0   :  { %6 = vsyncpa [#allocation3], 0  ;;  %s146_s0 = inlined_call_operand.hbm [shape: f32[16,128], index: 0, kind: input, shape index: {}]   ;;  %s147_s1 = inlined_call_operand.hbm [shape: f32[16,128], index: 1, kind: output, shape index: {}]  }
   0x1   :  { %7 = vsyncpa [#allocation4], 0  ;;  %s102_s6 = smov [#allocation2]   ;;  %s54_s10 = scalar_lea.hbm %s146_s0, 256 }
   0x2   :  { %s13_s7 = sshll.u32 %s102_s6, 4  ;;  %p55_p0 = scmp.ne.s32.totalorder %s146_s0, %s54_s10  ;;  %s14_s7 = int_to_ptr.vmem [resolvable:$true] %s13_s7 }
   0x3   :  { %p58_p1 = scmp.lt.u32.totalorder %s54_s10, %s146_s0 }
   0x5   :  { %p60_p2 = pnand %p58_p1, %p55_p0 }
   0x7   :  { %63 = shalt.err (!%p60_p2)
}
   0x8   :  { %s64_s15 = scalar_lea.vmem %s14_s7, 256  ;;  %p69_p4 = scmp.lt.s32.totalorder %s14_s7, %s14_s7 }
   0x9   :  { %p65_p3 = scmp.ne.s32.totalorder %s14_s7, %s64_s15  ;;  %p70_p5 = scmp.lt.s32.totalorder %s64_s15, %s64_s15 }
   0xb   :  { %p71_p6 = por %p70_p5, %p69_p4 }
   0xd   :  { %p72_p7 = pnand %p71_p6, %p65_p3 }
   0xf   :  { %75 = shalt.err (!%p72_p7)
}
  0x10   :  { %s103_s16 = smov 128   ;;  %s104_s17 = smov 8  }
  0x11   :  { %19 = dma.hbm_to_vmem [thread:$0]  %s146_s0, 256, %s14_s7, [#allocation3], %s103_s16, %s103_s16, %s104_s17  }
  0x12   :  { %98 = dma.done.wait [#allocation3], 256  }
  0x13   :  { %99 = vsyncadd [#allocation3], 4294967040  ;;  %v23_v0 = vld [vmem:[#allocation2] sm:$0xff]  ;;  %v24_v1 = vld [vmem:[#allocation2 + $0x8] sm:$0xff]  ;;  %s105_s20 = smov [#allocation5]  }
  0x14   :  { %s38_s21 = sshll.u32 %s105_s20, 4  ;;  %v25_v2 = vand.u32 2147483647, %v23_v0  ;;  %v26_v3 = vand.u32 2147483647, %v24_v1  ;;  %s39_s21 = int_to_ptr.vmem [resolvable:$true] %s38_s21 }
  0x15   :  { %s76_s22 = scalar_lea.vmem %s39_s21, 256  ;;  %p81_p9 = scmp.lt.s32.totalorder %s39_s21, %s39_s21 }
  0x16   :  { %vm27_vm0 = vcmp.le.f32.partialorder %v25_v2, 0.5  ;;  %vm28_vm1 = vcmp.le.f32.partialorder %v26_v3, 0.5  ;;  %p77_p8 = scmp.ne.s32.totalorder %s39_s21, %s76_s22  ;;  %p82_p10 = scmp.lt.s32.totalorder %s76_s22, %s76_s22 }
  0x17   :  { %v29_v4 = vsel %vm27_vm0, 0.0, %v23_v0  ;;  %v30_v5 = vsel %vm28_vm1, 0.0, %v24_v1 }
  0x18   :  { %31 = vst [vmem:[#allocation5] sm:$0xff] %v29_v4  ;;  %32 = vst [vmem:[#allocation5 + $0x8] sm:$0xff] %v30_v5  ;;  %p83_p11 = por %p82_p10, %p81_p9 }
  0x1a   :  { %p84_p12 = pnand %p83_p11, %p77_p8 }
  0x1c   :  { %87 = shalt.err (!%p84_p12)
}
  0x1d   :  { %s88_s24 = scalar_lea.hbm %s147_s1, 256 }
  0x1e   :  { %p89_p13 = scmp.ne.s32.totalorder %s147_s1, %s88_s24  ;;  %p92_p0 = scmp.lt.u32.totalorder %s88_s24, %s147_s1 }
  0x20   :  { %p94_p1 = pnand %p92_p0, %p89_p13 }
  0x22   :  { %97 = shalt.err (!%p94_p1)
}
  0x23   :  { %44 = dma.vmem_to_hbm [thread:$0]  %s39_s21, 256, %s147_s1, [#allocation4], %s103_s16, %s103_s16, %s104_s17  }
  0x24   :  { %100 = dma.done.wait [#allocation4], 256  }
  0x25   :  { %101 = vsyncadd [#allocation4], 4294967040 }
  0x26   :  { %48 = vsyncpa [#allocation3], 1 }
  0x27   :  { %49 = vsyncpa [#allocation4], 1 }

</bundles_post_ra>
